<compile_context>
chip_gen: v7x
topology: tpu7x:2x2x1
jax: 0.10.0
libtpu: 0.0.40
codegen_flags: <defaults>
</compile_context>

<pallas_src>
import jax
import jax.numpy as jnp
from jax import lax
from jax.experimental import pallas as pl
from jax.experimental.pallas import tpu as pltpu


def _round_up(x, m):
    return ((x + m - 1) // m) * m


# ----------------------------- Pallas kernels ------------------------------

def conv_stats_kernel(p_ref, w_ref, stats_ref):
    """Per (image, pixel-tile): y = P @ W on the MXU (bf16 in, f32 acc) and
    emit per-channel partial sum / sum-of-squares for training-mode BN."""
    y = jnp.dot(p_ref[...], w_ref[...], preferred_element_type=jnp.float32)
    # Separate row stores (no concatenate -> no XLU shuffle temporary).
    stats_ref[0:1, :] = jnp.sum(y, axis=0, keepdims=True)
    stats_ref[1:2, :] = jnp.sum(y * y, axis=0, keepdims=True)


def conv_bn_relu_kernel(p_ref, w_ref, scale_ref, shift_ref, o_ref):
    """Recompute the (small-K) matmul, apply folded bias+BN affine + ReLU and
    store the tile already transposed to channel-major (NCHW-friendly)."""
    y = jnp.dot(p_ref[...], w_ref[...], preferred_element_type=jnp.float32)
    y = y * scale_ref[...] + shift_ref[...]
    y = jnp.maximum(y, 0.0)
    o_ref[...] = jnp.transpose(y).astype(o_ref.dtype)   # (Cout_pad, tile_p)


# ------------------------------ host wrapper --------------------------------

def _im2col(x, kh, kw, stride, padding, dilation):
    """x: (N, Cin, H, W) -> (N, Ho*Wo, Cin*kh*kw); K-ordering matches
    weight.reshape(Cout, Cin*kh*kw)."""
    n, c, h, w = x.shape
    ho = (h + 2 * padding - dilation * (kh - 1) - 1) // stride + 1
    wo = (w + 2 * padding - dilation * (kw - 1) - 1) // stride + 1
    xp = jnp.pad(x, ((0, 0), (0, 0), (padding, padding), (padding, padding)))
    pieces = []
    for i in range(kh):
        for j in range(kw):
            hi, wi = i * dilation, j * dilation
            pieces.append(xp[:, :, hi:hi + stride * ho:stride,
                                    wi:wi + stride * wo:stride])
    cols = jnp.stack(pieces, axis=2)                 # (N, Cin, kh*kw, Ho, Wo)
    cols = cols.reshape(n, c * kh * kw, ho, wo)      # K order = (cin, kh, kw)
    cols = cols.transpose(0, 2, 3, 1)                # (N, Ho, Wo, K)
    return cols.reshape(n, ho * wo, c * kh * kw), ho, wo


def conv2d_bn_relu(x, weight, bias, gamma, beta, *, stride=1, padding=1,
                   dilation=1, eps=1e-5, tile_p=512):
    """x: (N, Cin, H, W) f32, weight: (Cout, Cin, kh, kw). Returns NCHW f32."""
    n, cin, h, w = x.shape
    cout, _, kh, kw = weight.shape

    # TODO(synk): for production backbone sizes, stream NHWC input directly and
    # express the kxk conv as k*k shifted (tile, Cin)x(Cin, Cout) MXU matmuls
    # instead of materializing the im2col matrix in HBM (kh*kw x read traffic).
    patches, ho, wo = _im2col(x, kh, kw, stride, padding, dilation)  # (N,P,K)
    p_pix = ho * wo
    k = cin * kh * kw

    # Lane-dense padding so every block's last dim is a 128-multiple.
    k_pad = _round_up(k, 128)
    cout_pad = _round_up(cout, 128)
    tile_p = min(tile_p, _round_up(p_pix, 128))
    p_pad = _round_up(p_pix, tile_p)
    n_tiles = p_pad // tile_p

    # bf16 MXU inputs, f32 accumulation.  Zero padding keeps the matmul and the
    # per-channel sum / sumsq exact (padded rows/cols contribute zeros, and the
    # conv bias is only folded in afterwards on the host).
    patches_p = jnp.pad(
        patches, ((0, 0), (0, p_pad - p_pix), (0, k_pad - k))
    ).astype(jnp.bfloat16)
    w_mat = weight.reshape(cout, k).T.astype(jnp.float32)            # (K,Cout)
    w_p = jnp.pad(w_mat, ((0, k_pad - k), (0, cout_pad - cout))
                  ).astype(jnp.bfloat16)

    grid = (n, n_tiles)
    parallel = pltpu.CompilerParams(
        dimension_semantics=("parallel", "parallel"))
    # NOTE: blocks here are <1 MiB, defaults are fine; for production tiles
    # raise vmem_limit_bytes per generation (<= 64 MiB physical on v7x).

    # --- pass 1: per-tile partial per-channel sum / sum-of-squares ----------
    # Partial stats per grid step (no resident accumulator) keep both grid
    # axes "parallel" so v7x's two TensorCores can split the work.
    partial_stats = pl.pallas_call(
        conv_stats_kernel,
        out_shape=jax.ShapeDtypeStruct((n, n_tiles, 2, cout_pad), jnp.float32),
        grid_spec=pltpu.PrefetchScalarGridSpec(
            num_scalar_prefetch=0,
            grid=grid,
            in_specs=[
                pl.BlockSpec((None, tile_p, k_pad), lambda b, j: (b, j, 0)),
                pl.BlockSpec((k_pad, cout_pad), lambda b, j: (0, 0)),
            ],
            out_specs=pl.BlockSpec((None, None, 2, cout_pad),
                                   lambda b, j: (b, j, 0, 0)),
        ),
        compiler_params=parallel,
    )(patches_p, w_p)

    # --- tiny host glue: fold conv-bias + training-mode BatchNorm into a
    # per-channel scale/shift (a few hundred floats of work) -----------------
    m_total = n * p_pix
    stats = jnp.sum(partial_stats, axis=(0, 1))          # (2, Cout_pad)
    mean_dot = stats[0] / m_total                        # mean of conv (no bias)
    var = jnp.maximum(stats[1] / m_total - mean_dot * mean_dot, 0.0)  # biased

    bias_p = jnp.pad(bias.astype(jnp.float32), (0, cout_pad - cout))
    gamma_p = jnp.pad(gamma.astype(jnp.float32), (0, cout_pad - cout))
    beta_p = jnp.pad(beta.astype(jnp.float32), (0, cout_pad - cout))

    inv_std = lax.rsqrt(var + eps)
    scale = gamma_p * inv_std
    mean_z = mean_dot + bias_p                           # stats of conv + bias
    # bn(dot + bias) = (dot + bias) * scale + (beta - mean_z * scale)
    #               = dot * scale + shift
    shift = (beta_p - mean_z * scale) + bias_p * scale
    scale = scale.reshape(1, cout_pad)
    shift = shift.reshape(1, cout_pad)

    # --- pass 2: fused conv-recompute + BN affine + ReLU, channel-major out --
    out_cm = pl.pallas_call(
        conv_bn_relu_kernel,
        out_shape=jax.ShapeDtypeStruct((n, cout_pad, p_pad), jnp.float32),
        grid_spec=pltpu.PrefetchScalarGridSpec(
            num_scalar_prefetch=0,
            grid=grid,
            in_specs=[
                pl.BlockSpec((None, tile_p, k_pad), lambda b, j: (b, j, 0)),
                pl.BlockSpec((k_pad, cout_pad), lambda b, j: (0, 0)),
                pl.BlockSpec((1, cout_pad), lambda b, j: (0, 0)),
                pl.BlockSpec((1, cout_pad), lambda b, j: (0, 0)),
            ],
            out_specs=pl.BlockSpec((None, cout_pad, tile_p),
                                   lambda b, j: (b, 0, j)),
        ),
        compiler_params=parallel,
    )(patches_p, w_p, scale, shift)

    # Already channel-major: just drop channel/pixel padding and reshape.
    out = out_cm[:, :cout, :p_pix].reshape(n, cout, ho, wo)
    return out


# --------------------------- pure-JAX reference ------------------------------

def reference(x, weight, bias, gamma, beta, *, stride=1, padding=1,
              dilation=1, eps=1e-5, mxu_precision=False):
    if mxu_precision:   # emulate bf16 MXU inputs / f32 accumulation
        xc = x.astype(jnp.bfloat16).astype(jnp.float32)
        wc = weight.astype(jnp.bfloat16).astype(jnp.float32)
    else:
        xc, wc = x, weight
    y = lax.conv_general_dilated(
        xc, wc, window_strides=(stride, stride),
        padding=((padding, padding), (padding, padding)),
        rhs_dilation=(dilation, dilation),
        dimension_numbers=("NCHW", "OIHW", "NCHW"))
    y = y + bias[None, :, None, None]
    mean = y.mean(axis=(0, 2, 3))
    var = y.var(axis=(0, 2, 3))                          # biased, as BN uses
    yn = (y - mean[None, :, None, None]) * lax.rsqrt(
        var[None, :, None, None] + eps)
    yn = yn * gamma[None, :, None, None] + beta[None, :, None, None]
    return jnp.maximum(yn, 0.0)


# ---------------------------------- main -------------------------------------

if __name__ == "__main__":
    key = jax.random.PRNGKey(0)
    k_x, k_w, k_b, k_g, k_be = jax.random.split(key, 5)

    # Conv2DBatchNormRelu(in_channels=4, n_filters=8, k_size=3, stride=1,
    #                     padding=1, bias=True, dilation=1, is_batchnorm=True)
    N, Cin, H, W = 2, 4, 16, 16
    Cout, kh, kw = 8, 3, 3

    x = jax.random.normal(k_x, (N, Cin, H, W), dtype=jnp.float32)
    fan_in = Cin * kh * kw
    bound = 1.0 / (fan_in ** 0.5)
    weight = jax.random.uniform(k_w, (Cout, Cin, kh, kw), jnp.float32,
                                -bound, bound)
    bias = jax.random.uniform(k_b, (Cout,), jnp.float32, -bound, bound)
    gamma = 1.0 + 0.1 * jax.random.normal(k_g, (Cout,), jnp.float32)
    beta = 0.1 * jax.random.normal(k_be, (Cout,), jnp.float32)

    out = conv2d_bn_relu(x, weight, bias, gamma, beta,
                         stride=1, padding=1, dilation=1)
    out = jax.block_until_ready(out)
    assert out.shape == (N, Cout, H, W)

    # Tight check vs. a reference that matches MXU input precision (bf16 in,
    # f32 accumulate) -- verifies im2col, stats, BN fold, ReLU, transpose.
    ref_mxu = reference(x, weight, bias, gamma, beta, stride=1, padding=1,
                        dilation=1, mxu_precision=True)
    err_mxu = float(jnp.max(jnp.abs(out - ref_mxu)))
    assert err_mxu < 2e-3, f"max abs error vs bf16-input reference {err_mxu}"

    # Loose sanity check vs. a full-f32 reference (bf16 MXU inputs only).
    ref_f32 = reference(x, weight, bias, gamma, beta, stride=1, padding=1,
                        dilation=1, mxu_precision=False)
    err_f32 = float(jnp.max(jnp.abs(out - ref_f32)))
    assert err_f32 < 1e-1, f"max abs error vs f32 reference {err_f32}"

    print("KERNEL_OK")
</pallas_src>

<mosaic_0001>
module attributes {stable_mosaic.version = 11 : i64} {
  func.func @conv_stats_kernel(%arg0: i32, %arg1: i32, %arg2: memref<1x256x128xbf16, #tpu.memory_space<vmem>>, %arg3: memref<128x128xbf16, #tpu.memory_space<vmem>>, %arg4: memref<1x1x2x128xf32, #tpu.memory_space<vmem>>) attributes {dimension_semantics = [#tpu.dimension_semantics<parallel>, #tpu.dimension_semantics<parallel>], iteration_bounds = array<i64: 2, 1>, scalar_prefetch = 0 : i64, scratch_operands = 0 : i64, tpu.core_type = #tpu.core_type<tc>, window_params = [{transform_indices = @transform_0, window_bounds = array<i64: 1, 256, 128>}, {pipeline_mode = #tpu.pipeline_mode<synchronous>, transform_indices = @transform_1, window_bounds = array<i64: 128, 128>}, {transform_indices = @transform_2, window_bounds = array<i64: 1, 1, 2, 128>}]} {
    %c0 = arith.constant 0 : index
    %c0_0 = arith.constant 0 : index
    %c0_1 = arith.constant 0 : index
    %0 = vector.load %arg2[%c0, %c0_0, %c0_1] : memref<1x256x128xbf16, #tpu.memory_space<vmem>>, vector<1x256x128xbf16>
    %1 = vector.shape_cast %0 : vector<1x256x128xbf16> to vector<256x128xbf16>
    %c0_2 = arith.constant 0 : index
    %c0_3 = arith.constant 0 : index
    %2 = vector.load %arg3[%c0_2, %c0_3] : memref<128x128xbf16, #tpu.memory_space<vmem>>, vector<128x128xbf16>
    %cst = arith.constant dense<0.000000e+00> : vector<256x128xf32>
    %3 = tpu.matmul %1, %2, %cst {dimension_numbers = #tpu.dot_dimension_numbers<[1], [0], [0], [1], [0, 0, 1, 1], [], []>} : vector<256x128xbf16>, vector<128x128xbf16>, vector<256x128xf32> -> vector<256x128xf32>
    %cst_4 = arith.constant dense<0.000000e+00> : vector<128xf32>
    %4 = vector.multi_reduction <add>, %3, %cst_4 [0] : vector<256x128xf32> to vector<128xf32>
    %5 = vector.shape_cast %4 : vector<128xf32> to vector<1x128xf32>
    %c0_5 = arith.constant 0 : index
    %c0_6 = arith.constant 0 : index
    %c0_7 = arith.constant 0 : index
    %c0_8 = arith.constant 0 : index
    %6 = vector.load %arg4[%c0_5, %c0_6, %c0_7, %c0_8] : memref<1x1x2x128xf32, #tpu.memory_space<vmem>>, vector<1x1x1x128xf32>
    %7 = vector.shape_cast %6 : vector<1x1x1x128xf32> to vector<1x128xf32>
    %8 = vector.shape_cast %5 : vector<1x128xf32> to vector<1x1x1x128xf32>
    tpu.vector_store %arg4[%c0_5, %c0_6, %c0_7, %c0_8], %8 {strides = array<i32>} : memref<1x1x2x128xf32, #tpu.memory_space<vmem>>, vector<1x1x1x128xf32>,
    %9 = arith.mulf %3, %3 : vector<256x128xf32>
    %cst_9 = arith.constant dense<0.000000e+00> : vector<128xf32>
    %10 = vector.multi_reduction <add>, %9, %cst_9 [0] : vector<256x128xf32> to vector<128xf32>
    %11 = vector.shape_cast %10 : vector<128xf32> to vector<1x128xf32>
    %c0_10 = arith.constant 0 : index
    %c0_11 = arith.constant 0 : index
    %c1 = arith.constant 1 : index
    %c0_12 = arith.constant 0 : index
    %12 = vector.load %arg4[%c0_10, %c0_11, %c1, %c0_12] : memref<1x1x2x128xf32, #tpu.memory_space<vmem>>, vector<1x1x1x128xf32>
    %13 = vector.shape_cast %12 : vector<1x1x1x128xf32> to vector<1x128xf32>
    %14 = vector.shape_cast %11 : vector<1x128xf32> to vector<1x1x1x128xf32>
    tpu.vector_store %arg4[%c0_10, %c0_11, %c1, %c0_12], %14 {strides = array<i32>} : memref<1x1x2x128xf32, #tpu.memory_space<vmem>>, vector<1x1x1x128xf32>,
    return
  }
  func.func @transform_0(%arg0: i32, %arg1: i32) -> (i32, i32, i32) {
    %c0_i32 = arith.constant 0 : i32
    %c0_i32_0 = arith.constant 0 : i32
    return %arg0, %arg1, %c0_i32 : i32, i32, i32
  }
  func.func @transform_1(%arg0: i32, %arg1: i32) -> (i32, i32) {
    %c0_i32 = arith.constant 0 : i32
    %c0_i32_0 = arith.constant 0 : i32
    %c0_i32_1 = arith.constant 0 : i32
    return %c0_i32, %c0_i32_0 : i32, i32
  }
  func.func @transform_2(%arg0: i32, %arg1: i32) -> (i32, i32, i32, i32) {
    %c0_i32 = arith.constant 0 : i32
    %c0_i32_0 = arith.constant 0 : i32
    %c0_i32_1 = arith.constant 0 : i32
    return %arg0, %arg1, %c0_i32, %c0_i32_0 : i32, i32, i32, i32
  }
}

</mosaic_0001>

<bundles_post_ra>
// kernel: tpu_custom_call.1
= control target key start
LH: loop header
LB: loop body
LE: loop exit
PB: predicated region body
PF: predicated region fallthrough
CT: control target
= control target key end

     0   :  { %7 = vsyncpa [#allocation3], 0  ;;  %s1451_s0 = inlined_call_operand.hbm [shape: bf16[2,256,128], index: 0, kind: input, shape index: {}]   ;;  %s1452_s1 = inlined_call_operand.hbm [shape: bf16[128,128], index: 1, kind: input, shape index: {}]   ;;  %s1453_s2 = inlined_call_operand.hbm [shape: f32[2,1,2,128], index: 2, kind: output, shape index: {}]  }
   0x1   :  { %9 = vsyncpa [#allocation3 + $0x1], 0 }
   0x2   :  { %10 = vsyncpa [#allocation6], 0 }
   0x3   :  { %11 = vsyncpa [#allocation4], 0 }
   0x4   :  { %13 = vsyncpa [#allocation4 + $0x1], 0  ;;  %s1159_s9 = smov 0   ;;  %s1161_s10 = smov 0  }
   0x5   :  { %s1163_s11 = smov 0   ;;  %s1165_s12 = smov 0  }
   0x6   :  { %s1167_s13 = smov 0   ;;  %s1169_s14 = smov 0  }
   0x7 LB: > { %s765_s15 = sadd.s32 4294967295, %s1137_s14   ;;  %s766_s16 = sadd.s32 4294967294, %s1137_s14   ;;  %s1137_s14 = sphi %s1169_s14, %s19_s14   ;;  %s1133_s13 = sphi %s1167_s13, %s1477_s13   ;;  %s1129_s12 = sphi %s1165_s12, %s1476_s12   ;;  %s1125_s11 = sphi %s1163_s11, %s1475_s11   ;;  %s1121_s10 = sphi %s1161_s10, %s1474_s10   ;;  %s1117_s9 = sphi %s1159_s9, %s1473_s9  }
   0x8   : > { %p53_p0 = scmp.ne.s32.totalorder %s1121_s10, %s1117_s9  ;;  %p1193_p1 = scmp.eq.s32.totalorder %s765_s15, 0 }
   0x9   : > { %p1197_p2 = scmp.eq.s32.totalorder %s765_s15, 1  ;;  %p106_p3 = scmp.eq.s32.totalorder %s766_s16, 1 }
   0xa   : > { %s1458_s17 = scalar_select %p1193_p1, 1, 0 }
   0xb   : > { %s1459_s18 = scalar_select %p1197_p2, 1, 0 }
   0xc   : > { %p1203_p4 = por %p1193_p1, %p53_p0  ;;  %p767_p5 = scmp.ge.s32.totalorder %s1137_s14, 1 }
   0xd   : > { %p1208_p6 = por %p106_p3, %p53_p0  ;;  %p113_p7 = scmp.lt.s32.totalorder %s1137_s14, 3 }
   0xe   : > { %s1460_s19 = scalar_select %p1203_p4, 1, 0 }
   0xf   : > { %s1461_s20 = scalar_select %p1208_p6, 1, 0 }
  0x10   : > { %p1213_p8 = pnand %p767_p5, %p113_p7  ;;  %s1139_s22 = smov [#allocation5]  }
  0x11   : > { %s125_s23 = sshll.u32 %s1139_s22, 4  ;;  %s31_s25 = sadd.s32 1, %s1133_s13  ;;  %s126_s23 = int_to_ptr.vmem [resolvable:$true] %s125_s23 }
  0x12   : > { %s1462_s21 = scalar_select %p1213_p8, 1, 0 }
  0x13   : > { %p902_p9 = pneg %p1213_p8  ;;  %s993_s28 = scalar_lea.hbm %s1452_s1, 1024 }
  0x14   : > { %p994_p12 = scmp.ne.s32.totalorder %s1452_s1, %s993_s28  ;;  %p1000_p5 = scmp.lt.u32.totalorder %s993_s28, %s1452_s1 }
  0x15   : > { %p1222_p11 = pnand %p902_p9, %p1193_p1 }
  0x17   : > { %p995_p13 = pneg %p1222_p11 }
  0x19   : > { %p996_p0 = pnand %p995_p13, %p994_p12 }
  0x1b   : > { %p997_p3 = pneg %p996_p0 }
  0x1d   : > { %p1002_p7 = pnand %p1000_p5, %p997_p3 }
  0x1f   : > { %1005 = shalt.err (!%p1002_p7)
}
  0x20   : > { %s1006_s5 = scalar_lea.vmem %s126_s23, 1024  ;;  %p1014_p1 = scmp.lt.s32.totalorder %s126_s23, %s126_s23 }
  0x21   : > { %p1007_p9 = scmp.ne.s32.totalorder %s126_s23, %s1006_s5  ;;  %p1015_p4 = scmp.lt.s32.totalorder %s1006_s5, %s1006_s5 }
  0x23   : > { %p1009_p10 = pnand %p1007_p9, %p995_p13  ;;  %p1016_p8 = por %p1015_p4, %p1014_p1 }
  0x25   : > { %p1010_p6 = pneg %p1009_p10 }
  0x27   : > { %p1017_p2 = pnand %p1016_p8, %p1010_p6 }
  0x29   : > { %1020 = shalt.err (!%p1017_p2)
}
  0x2a   : > { %s1140_s6 = smov 64   ;;  %s1141_s7 = smov 4  }
  0x2b   : > { %905 = dma.hbm_to_vmem [thread:$0]  (!%p1222_p11), %s1452_s1, 1024, %s126_s23, [#allocation6], %s1140_s6, %s1140_s6, %s1141_s7  }
  0x2c   : > { %p33_p1 = scmp.ge.s32.totalorder %s31_s25, 2  ;;  %s40_s16 = sadd.s32 1, %s1125_s11 }
  0x2d   : > { %p47_p2 = scmp.ne.s32.totalorder %s1125_s11, %s1121_s10  ;;  %p48_p4 = scmp.eq.s32.totalorder %s1137_s14, 0 }
  0x2e   : > { %s1479_s25 = smov (%p33_p1, %s31_s25), 0  ;;  %p1465_p8 = scmp.ne.s32.totalorder %s1459_s18, 0 }
  0x2f   : > { %p1252_p6 = por %p48_p4, %p47_p2  ;;  %s35_s26 = ssub.s32 %s1133_s13, %s1479_s25 }
  0x30   : > { %p1258_p10 = por %p1465_p8, %p47_p2  ;;  %p915_p12 = scmp.lt.s32.totalorder %s1137_s14, 2 }
  0x31   : > { %p38_p11 = scmp.eq.s32.totalorder %s35_s26, 0  ;;  %s139_s23 = sand.u32 1, %s1125_s11  }
  0x32   : > { %s770_s27 = sshll.u32 %s139_s23, 7  ;;  %s805_s29 = sshll.u32 %s1133_s13, 11 }
  0x33   : > { %s1267_s28 = scalar_select %p38_p11, %s1125_s11, %s40_s16  }
  0x34   : > { %s1273_s4 = scalar_lea.hbm %s1451_s0, %s805_s29  ;;  %s143_s18 = scalar_lea.vmem [#allocation2], %s770_s27 }
  0x35   : > { %s152_s5 = sshll.u32 %s143_s18, 4  ;;  %p1279_p13 = pnand %p915_p12, %p1252_p6  ;;  %s1275_s5 = int_to_ptr.vmem [resolvable:$true] %s152_s5 }
  0x36   : > { %s1283_s15 = scalar_lea.sflag [#allocation3], %s139_s23  ;;  %s1021_s16 = scalar_lea.hbm %s1273_s4, 2048 }
  0x37   : > { %p1022_p0 = scmp.ne.s32.totalorder %s1273_s4, %s1021_s16  ;;  %p1023_p3 = pneg %p1279_p13 }
  0x38   : > { %s1026_s22 = scalar_lea.hbm %s1451_s0, 4096  ;;  %p1027_p9 = scmp.lt.u32.totalorder %s1273_s4, %s1451_s0 }
  0x39   : > { %p1024_p5 = pnand %p1023_p3, %p1022_p0  ;;  %p1028_p1 = scmp.lt.u32.totalorder %s1026_s22, %s1021_s16 }
  0x3a   : > { %p1030_p4 = scmp.lt.u32.totalorder %s1021_s16, %s1273_s4 }
  0x3b   : > { %p1025_p7 = pneg %p1024_p5  ;;  %p1029_p2 = por %p1028_p1, %p1027_p9 }
  0x3d   : > { %p1031_p6 = por %p1030_p4, %p1029_p2 }
  0x3f   : > { %p1032_p8 = pnand %p1031_p6, %p1025_p7 }
  0x41   : > { %1035 = shalt.err (!%p1032_p8)
}
  0x42   : > { %s1036_s23 = scalar_lea.vmem %s1275_s5, 2048  ;;  %s1142_s3 = smov [#allocation2]  }
  0x43   : > { %p1037_p12 = scmp.ne.s32.totalorder %s1275_s5, %s1036_s23  ;;  %s1041_s18 = sshll.u32 %s1142_s3, 4  ;;  %s1042_s18 = int_to_ptr.vmem [resolvable:$false] %s1041_s18 }
  0x44   : > { %s1043_s26 = scalar_lea.vmem %s1042_s18, 4096  ;;  %p1044_p5 = scmp.lt.s32.totalorder %s1275_s5, %s1042_s18 }
  0x45   : > { %p1039_p11 = pnand %p1037_p12, %p1023_p3  ;;  %p1045_p9 = scmp.lt.s32.totalorder %s1043_s26, %s1036_s23 }
  0x47   : > { %p1040_p0 = pneg %p1039_p11  ;;  %p1046_p1 = por %p1045_p9, %p1044_p5 }
  0x49   : > { %p1047_p2 = pnand %p1046_p1, %p1040_p0 }
  0x4b   : > { %1050 = shalt.err (!%p1047_p2)
}
  0x4c   : > { %909 = dma.hbm_to_vmem [thread:$0]  (!%p1279_p13), %s1273_s4, 2048, %s1275_s5, %s1283_s15, %s1140_s6, %s1140_s6, %s1141_s7  }
  0x4d   : > { %p1468_p3 = scmp.ne.s32.totalorder %s1462_s21, 0 }
  0x4e   : > { %s1317_s16 = sand.u32 (!%p1468_p3), 1, %s1121_s10   ;;  %p1469_p7 = scmp.ne.s32.totalorder (!%p1468_p3), %s1460_s19, 0 }
  0x4f   : > { %164 = sbr.rel (%p1468_p3) target bundleno = 428 (0x1ac), region = 28  ;;  %s774_s27 = sshll.u32 (!%p1468_p3), %s1317_s16, 7 }
  0x50   : > { %s167_s22 = scalar_lea.sflag (!%p1468_p3), [#allocation3], %s1317_s16  ;;  %s1321_s29 = scalar_lea.vmem (!%p1468_p3), [#allocation2], %s774_s27 }
  0x56   : > { %1104 = dma.done.wait (%p1469_p7), %s167_s22, 2048  }
  0x57   : > { %1106 = vsyncadd (%p1469_p7), %s167_s22, 4294965248  ;;  %p1470_p13 = scmp.ne.s32.totalorder %s1458_s17, 0 }
  0x59   : > { %1108 = dma.done.wait (%p1470_p13), [#allocation6], 1024  }
  0x5a   : > { %1110 = vsyncadd (%p1470_p13), [#allocation6], 4294966272  ;;  %v969_v0 = vld [vmem:[#allocation5] sm:$0xff]   ;;  %v970_v1 = vld [vmem:[#allocation5 + $0x8] sm:$0xff]   ;;  %s776_s17 = sshll.u32 %s1317_s16, 1  ;;  %s802_s19 = sshll.u32 %s1129_s12, 5 }
  0x5b   : > { %830 = vmatprep.subr.bf16.mxu0 %v969_v0  ;;  %878 = vmatprep.subr.bf16.mxu1 %v969_v0  ;;  %v971_v2 = vld [vmem:[#allocation5 + $0x10] sm:$0xff]   ;;  %v972_v3 = vld [vmem:[#allocation5 + $0x18] sm:$0xff]   ;;  %v977_v4 = vld [vmem:[%s1321_s29] sm:$0xff]   ;;  %s194_s21 = scalar_lea.vmem [#allocation7], %s776_s17  ;;  %s1402_s5 = scalar_lea.hbm %s1453_s2, %s802_s19 }
  0x5c   : > { %831 = vmatpush3.bf16.msra.mxu0 %v969_v0  ;;  %886 = vmatpush3.bf16.msra.mxu1 %v969_v0  ;;  %v973_v5 = vld [vmem:[#allocation5 + $0x20] sm:$0xff]   ;;  %v974_v6 = vld [vmem:[#allocation5 + $0x28] sm:$0xff]   ;;  %v975_v8 = vld [vmem:[#allocation5 + $0x30] sm:$0xff]   ;;  %s673_s6 = sshll.u32 %s194_s21, 4  ;;  %s659_s8 = scalar_lea.sflag [#allocation4], %s1317_s16  ;;  %s1404_s6 = int_to_ptr.vmem [resolvable:$true] %s673_s6 }
  0x5d   : > { %832 = vmatprep.subr.bf16.mxu0 %v970_v1  ;;  %879 = vmatprep.subr.bf16.mxu1 %v970_v1  ;;  %v985_v7 = vld [vmem:[%s1321_s29 + $0x40] sm:$0xff]   ;;  %v976_v9 = vld [vmem:[#allocation5 + $0x38] sm:$0xff]   ;;  %v978_v10 = vld [vmem:[%s1321_s29 + $0x8] sm:$0xff]   ;;  %s1051_s15 = scalar_lea.vmem %s1404_s6, 32  ;;  %s1143_s12 = smov [#allocation7]  }
  0x5e   : > { %846 = vmatprep.mubr.bf16.mxu0 %v977_v4  ;;  %862 = vmatprep.mubr.bf16.mxu1 %v985_v7  ;;  %v986_v11 = vld [vmem:[%s1321_s29 + $0x48] sm:$0xff]   ;;  %v979_v12 = vld [vmem:[%s1321_s29 + $0x10] sm:$0xff]   ;;  %v980_v14 = vld [vmem:[%s1321_s29 + $0x18] sm:$0xff]   ;;  %p1052_p4 = scmp.ne.s32.totalorder %s1404_s6, %s1051_s15  ;;  %s1055_s30 = sshll.u32 %s1143_s12, 4  ;;  %s1056_s30 = int_to_ptr.vmem [resolvable:$false] %s1055_s30 }
  0x5f   : > { %v987_v13 = vld [vmem:[%s1321_s29 + $0x50] sm:$0xff]   ;;  %v988_v15 = vld [vmem:[%s1321_s29 + $0x58] sm:$0xff]   ;;  %v981_v16 = vld [vmem:[%s1321_s29 + $0x20] sm:$0xff]   ;;  %s1057_s23 = scalar_lea.vmem %s1056_s30, 64  ;;  %p1058_p12 = scmp.lt.s32.totalorder %s1404_s6, %s1056_s30 }
  0x60   : > { %833 = vmatpush3.bf16.msra.mxu0 %v970_v1  ;;  %887 = vmatpush3.bf16.msra.mxu1 %v970_v1  ;;  %v989_v17 = vld [vmem:[%s1321_s29 + $0x60] sm:$0xff]   ;;  %v982_v18 = vld [vmem:[%s1321_s29 + $0x28] sm:$0xff]   ;;  %v983_v20 = vld [vmem:[%s1321_s29 + $0x30] sm:$0xff]   ;;  %p1053_p6 = pnand %p1052_p4, %p1258_p10  ;;  %p1059_p11 = scmp.lt.s32.totalorder %s1057_s23, %s1051_s15 }
  0x61   : > { %834 = vmatprep.subr.bf16.mxu0 %v971_v2  ;;  %880 = vmatprep.subr.bf16.mxu1 %v971_v2  ;;  %v990_v19 = vld [vmem:[%s1321_s29 + $0x68] sm:$0xff]   ;;  %v991_v21 = vld [vmem:[%s1321_s29 + $0x70] sm:$0xff]   ;;  %v984_v22 = vld [vmem:[%s1321_s29 + $0x38] sm:$0xff]  }
  0x62   : > { %v992_v23 = vld [vmem:[%s1321_s29 + $0x78] sm:$0xff]   ;;  %p1054_p8 = pneg %p1053_p6  ;;  %p1060_p0 = por %p1059_p11, %p1058_p12 }
  0x64   : > { %835 = vmatpush3.bf16.msra.mxu0 %v971_v2  ;;  %888 = vmatpush3.bf16.msra.mxu1 %v971_v2  ;;  %p1061_p5 = pnand %p1060_p0, %p1054_p8 }
  0x65   : > { %836 = vmatprep.subr.bf16.mxu0 %v972_v3  ;;  %881 = vmatprep.subr.bf16.mxu1 %v972_v3 }
  0x68   : > { %837 = vmatpush3.bf16.msra.mxu0 %v972_v3  ;;  %889 = vmatpush3.bf16.msra.mxu1 %v972_v3 }
  0x69   : > { %838 = vmatprep.subr.bf16.mxu0 %v973_v5  ;;  %882 = vmatprep.subr.bf16.mxu1 %v973_v5 }
  0x6c   : > { %839 = vmatpush3.bf16.msra.mxu0 %v973_v5  ;;  %890 = vmatpush3.bf16.msra.mxu1 %v973_v5 }
  0x6d   : > { %840 = vmatprep.subr.bf16.mxu0 %v974_v6  ;;  %883 = vmatprep.subr.bf16.mxu1 %v974_v6 }
  0x70   : > { %841 = vmatpush3.bf16.msra.mxu0 %v974_v6  ;;  %891 = vmatpush3.bf16.msra.mxu1 %v974_v6 }
  0x71   : > { %842 = vmatprep.subr.bf16.mxu0 %v975_v8  ;;  %884 = vmatprep.subr.bf16.mxu1 %v975_v8 }
  0x74   : > { %843 = vmatpush3.bf16.msra.mxu0 %v975_v8  ;;  %892 = vmatpush3.bf16.msra.mxu1 %v975_v8 }
  0x75   : > { %844 = vmatprep.subr.bf16.mxu0 %v976_v9  ;;  %885 = vmatprep.subr.bf16.mxu1 %v976_v9 }
  0x78   : > { %845 = vmatpush3.bf16.msra.mxu0 %v976_v9  ;;  %893 = vmatpush3.bf16.msra.mxu1 %v976_v9 }
  0x7b   : > { %847 = vmatmul.mubr.bf16.vlgmr.msra.gmra.mrb[0].mxu0 %v978_v10  ;;  %863 = vmatmul.mubr.bf16.vlgmr.msra.gmra.mrb[0].mxu1 %v986_v11 }
  0x7c   : > { %850 = vmatprep.mubr.bf16.mxu0 %v979_v12  ;;  %866 = vmatprep.mubr.bf16.mxu1 %v987_v13 }
  0x83   : > { %851 = vmatmul.mubr.bf16.gmra.mrb[4].mxu0 %v980_v14  ;;  %867 = vmatmul.mubr.bf16.gmra.mrb[4].mxu1 %v988_v15 }
  0x84   : > { %854 = vmatprep.mubr.bf16.mxu0 %v981_v16  ;;  %870 = vmatprep.mubr.bf16.mxu1 %v989_v17 }
  0x8b   : > { %855 = vmatmul.mubr.bf16.gmra.mrb[8].mxu0 %v982_v18  ;;  %871 = vmatmul.mubr.bf16.gmra.mrb[8].mxu1 %v990_v19 }
  0x8c   : > { %858 = vmatprep.mubr.bf16.mxu0 %v983_v20  ;;  %874 = vmatprep.mubr.bf16.mxu1 %v991_v21 }
  0x93   : > { %859 = vmatmul.mubr.bf16.gmra.mrb[12].mxu0 %v984_v22  ;;  %875 = vmatmul.mubr.bf16.gmra.mrb[12].mxu1 %v992_v23 }
 0x14e   : > { %v848_v24 = vpop.f32.mrb[0].mxu0  ;;  %v1347_v25 = vpop.f32.mrb[0].mxu1 }
 0x14f   : > { %v423_v26 = vpop.f32.mrb[1].mxu0  ;;  %v1349_v27 = vpop.f32.mrb[1].mxu1  ;;  %v590_v35 = vmul.f32 %v848_v24, %v848_v24 }
 0x150   : > { %v849_v28 = vpop.f32.mrb[2].mxu0  ;;  %v1351_v29 = vpop.f32.mrb[2].mxu1  ;;  %v588_v32 = vmul.f32 %v423_v26, %v423_v26 }
 0x151   : > { %v426_v30 = vpop.f32.mrb[3].mxu0  ;;  %v1353_v31 = vpop.f32.mrb[3].mxu1  ;;  %v591_v38 = vmul.f32 %v849_v28, %v849_v28 }
 0x152   : > { %v550_v33 = vadd.f32 %v426_v30, %v423_v26  ;;  %v589_v34 = vmul.f32 %v426_v30, %v426_v30 }
 0x154   : > { %v551_v36 = vadd.f32 %v848_v24, %v550_v33  ;;  %v620_v37 = vadd.f32 %v589_v34, %v588_v32 }
 0x156   : > { %v621_v39 = vadd.f32 %v620_v37, %v590_v35  ;;  %v852_v40 = vpop.f32.mrb[4].mxu0  ;;  %v552_v41 = vadd.f32 %v849_v28, %v551_v36  ;;  %v1355_v42 = vpop.f32.mrb[4].mxu1 }
 0x157   : > { %v439_v43 = vpop.f32.mrb[5].mxu0  ;;  %v1357_v44 = vpop.f32.mrb[5].mxu1  ;;  %v594_v55 = vmul.f32 %v852_v40, %v852_v40 }
 0x158   : > { %v553_v45 = vadd.f32 %v552_v41, %v439_v43  ;;  %v592_v46 = vmul.f32 %v439_v43, %v439_v43  ;;  %v622_v47 = vadd.f32 %v621_v39, %v591_v38  ;;  %v853_v48 = vpop.f32.mrb[6].mxu0  ;;  %v1359_v49 = vpop.f32.mrb[6].mxu1  ;;  %v604_v41 = vmul.f32 %v1349_v27, %v1349_v27 }
 0x159   : > { %v442_v50 = vpop.f32.mrb[7].mxu0  ;;  %v1361_v51 = vpop.f32.mrb[7].mxu1  ;;  %v595_v58 = vmul.f32 %v853_v48, %v853_v48 }
 0x15a   : > { %v623_v52 = vadd.f32 %v622_v47, %v592_v46  ;;  %v554_v53 = vadd.f32 %v553_v45, %v442_v50  ;;  %v593_v54 = vmul.f32 %v442_v50, %v442_v50  ;;  %v606_v50 = vmul.f32 %v1347_v25, %v1347_v25 }
 0x15c   : > { %v555_v56 = vadd.f32 %v852_v40, %v554_v53  ;;  %v624_v57 = vadd.f32 %v623_v52, %v593_v54  ;;  %v607_v54 = vmul.f32 %v1351_v29, %v1351_v29 }
 0x15e   : > { %v625_v59 = vadd.f32 %v624_v57, %v594_v55  ;;  %v856_v60 = vpop.f32.mrb[8].mxu0  ;;  %v556_v61 = vadd.f32 %v853_v48, %v555_v56  ;;  %v1363_v62 = vpop.f32.mrb[8].mxu1  ;;  %v605_v48 = vmul.f32 %v1353_v31, %v1353_v31 }
 0x15f   : > { %v455_v63 = vpop.f32.mrb[9].mxu0  ;;  %v519_v0 = vpop.f32.mrb[9].mxu1  ;;  %v598_v11 = vmul.f32 %v856_v60, %v856_v60 }
 0x160   : > { %v557_v1 = vadd.f32 %v556_v61, %v455_v63  ;;  %v596_v2 = vmul.f32 %v455_v63, %v455_v63  ;;  %v626_v3 = vadd.f32 %v625_v59, %v595_v58  ;;  %v857_v4 = vpop.f32.mrb[10].mxu0  ;;  %v1365_v5 = vpop.f32.mrb[10].mxu1 }
 0x161   : > { %v458_v6 = vpop.f32.mrb[11].mxu0  ;;  %v522_v7 = vpop.f32.mrb[11].mxu1  ;;  %v599_v14 = vmul.f32 %v857_v4, %v857_v4 }
 0x162   : > { %v627_v8 = vadd.f32 %v626_v3, %v596_v2  ;;  %v558_v9 = vadd.f32 %v557_v1, %v458_v6  ;;  %v597_v10 = vmul.f32 %v458_v6, %v458_v6 }
 0x164   : > { %v559_v12 = vadd.f32 %v856_v60, %v558_v9  ;;  %v628_v13 = vadd.f32 %v627_v8, %v597_v10  ;;  %v609_v60 = vmul.f32 %v1361_v51, %v1361_v51  ;;  %v613_v9 = vmul.f32 %v522_v7, %v522_v7 }
 0x166   : > { %v629_v15 = vadd.f32 %v628_v13, %v598_v11  ;;  %v860_v16 = vpop.f32.mrb[12].mxu0  ;;  %v560_v17 = vadd.f32 %v857_v4, %v559_v12  ;;  %v876_v18 = vpop.f32.mrb[12].mxu1 }
 0x167   : > { %v471_v19 = vpop.f32.mrb[13].mxu0  ;;  %v535_v20 = vpop.f32.mrb[13].mxu1  ;;  %v602_v35 = vmul.f32 %v860_v16, %v860_v16 }
 0x168   : > { %v561_v21 = vadd.f32 %v560_v17, %v471_v19  ;;  %v600_v22 = vmul.f32 %v471_v19, %v471_v19  ;;  %v630_v23 = vadd.f32 %v629_v15, %v599_v14  ;;  %v861_v24 = vpop.f32.mrb[14].mxu0  ;;  %v877_v26 = vpop.f32.mrb[14].mxu1  ;;  %v616_v14 = vmul.f32 %v535_v20, %v535_v20 }
 0x169   : > { %v474_v28 = vpop.f32.mrb[15].mxu0  ;;  %v538_v30 = vpop.f32.mrb[15].mxu1  ;;  %v603_v38 = vmul.f32 %v861_v24, %v861_v24 }
 0x16a   : > { %v631_v32 = vadd.f32 %v630_v23, %v600_v22  ;;  %v562_v33 = vadd.f32 %v561_v21, %v474_v28  ;;  %v601_v34 = vmul.f32 %v474_v28, %v474_v28  ;;  %v617_v17 = vmul.f32 %v538_v30, %v538_v30 }
 0x16b   : > { %v619_v22 = vmul.f32 %v877_v26, %v877_v26 }
 0x16c   : > { %v563_v36 = vadd.f32 %v860_v16, %v562_v33  ;;  %v632_v37 = vadd.f32 %v631_v32, %v601_v34 }
 0x16e   : > { %v633_v39 = vadd.f32 %v632_v37, %v602_v35  ;;  %v564_v40 = vadd.f32 %v861_v24, %v563_v36 }
 0x170   : > { %v565_v43 = vadd.f32 %v564_v40, %v1349_v27  ;;  %v634_v45 = vadd.f32 %v633_v39, %v603_v38  ;;  %v608_v27 = vmul.f32 %v1357_v44, %v1357_v44 }
 0x172   : > { %v635_v46 = vadd.f32 %v634_v45, %v604_v41  ;;  %v566_v47 = vadd.f32 %v565_v43, %v1353_v31 }
 0x174   : > { %v567_v52 = vadd.f32 %v1347_v25, %v566_v47  ;;  %v636_v53 = vadd.f32 %v635_v46, %v605_v48  ;;  %v610_v25 = vmul.f32 %v1355_v42, %v1355_v42 }
 0x176   : > { %v637_v55 = vadd.f32 %v636_v53, %v606_v50  ;;  %v568_v56 = vadd.f32 %v1351_v29, %v567_v52  ;;  %v611_v29 = vmul.f32 %v1359_v49, %v1359_v49 }
 0x178   : > { %v569_v57 = vadd.f32 %v568_v56, %v1357_v44  ;;  %v638_v58 = vadd.f32 %v637_v55, %v607_v54  ;;  %v612_v44 = vmul.f32 %v519_v0, %v519_v0 }
 0x17a   : > { %v639_v59 = vadd.f32 %v638_v58, %v608_v27  ;;  %v570_v31 = vadd.f32 %v569_v57, %v1361_v51  ;;  %v614_v51 = vmul.f32 %v1363_v62, %v1363_v62 }
 0x17c   : > { %v571_v61 = vadd.f32 %v1355_v42, %v570_v31  ;;  %v640_v63 = vadd.f32 %v639_v59, %v609_v60  ;;  %v615_v42 = vmul.f32 %v1365_v5, %v1365_v5 }
 0x17e   : > { %v641_v1 = vadd.f32 %v640_v63, %v610_v25  ;;  %v572_v2 = vadd.f32 %v1359_v49, %v571_v61 }
 0x180   : > { %v573_v3 = vadd.f32 %v572_v2, %v519_v0  ;;  %v642_v4 = vadd.f32 %v641_v1, %v611_v29 }
 0x182   : > { %v643_v6 = vadd.f32 %v642_v4, %v612_v44  ;;  %v574_v8 = vadd.f32 %v573_v3, %v522_v7  ;;  %v618_v7 = vmul.f32 %v876_v18, %v876_v18 }
 0x184   : > { %v575_v10 = vadd.f32 %v1363_v62, %v574_v8  ;;  %v644_v11 = vadd.f32 %v643_v6, %v613_v9 }
 0x186   : > { %v645_v12 = vadd.f32 %v644_v11, %v614_v51  ;;  %v576_v13 = vadd.f32 %v1365_v5, %v575_v10 }
 0x188   : > { %v577_v49 = vadd.f32 %v576_v13, %v535_v20  ;;  %v646_v0 = vadd.f32 %v645_v12, %v615_v42 }
 0x18a   : > { %v647_v15 = vadd.f32 %v646_v0, %v616_v14  ;;  %v578_v16 = vadd.f32 %v577_v49, %v538_v30 }
 0x18c   : > { %v579_v19 = vadd.f32 %v876_v18, %v578_v16  ;;  %v648_v21 = vadd.f32 %v647_v15, %v617_v17 }
 0x18e   : > { %v580_v62 = vadd.f32 %v877_v26, %v579_v19  ;;  %v649_v23 = vadd.f32 %v648_v21, %v618_v7 }
 0x190   : > { %v581_v24 = vrot.slane %v580_v62, 4  ;;  %v650_v28 = vadd.f32 %v649_v23, %v619_v22 }
 0x192   : > { %v582_v32 = vadd.f32 %v581_v24, %v580_v62  ;;  %v651_v33 = vrot.slane %v650_v28, 4 }
 0x194   : > { %v583_v5 = vrot.slane %v582_v32, 2  ;;  %v652_v34 = vadd.f32 %v651_v33, %v650_v28 }
 0x196   : > { %v584_v20 = vadd.f32 %v583_v5, %v582_v32  ;;  %v653_v35 = vrot.slane %v652_v34, 2 }
 0x198   : > { %v585_v36 = vrot.slane %v584_v20, 1  ;;  %v654_v30 = vadd.f32 %v653_v35, %v652_v34 }
 0x19a   : > { %v586_v18 = vadd.f32 %v585_v36, %v584_v20  ;;  %v655_v37 = vrot.slane %v654_v30, 1 }
 0x19c   : > { %v656_v26 = vadd.f32 %v655_v37, %v654_v30  ;;  %587 = vst [vmem:[%s194_s21] sm:$0x1] %v586_v18 }
 0x19e   : > { %657 = vst [vmem:[%s194_s21 + $0x1] sm:$0x1] %v656_v26 }
 0x19f   : > { %1064 = shalt.err (!%p1061_p5)
}
 0x1a0   : > { %s1065_s3 = scalar_lea.hbm %s1402_s5, 32  ;;  %s1069_s16 = scalar_lea.hbm %s1453_s2, 64 }
 0x1a1   : > { %p1066_p9 = scmp.ne.s32.totalorder %s1402_s5, %s1065_s3  ;;  %p1070_p3 = scmp.lt.u32.totalorder %s1402_s5, %s1453_s2 }
 0x1a2   : > { %p1071_p7 = scmp.lt.u32.totalorder %s1069_s16, %s1065_s3  ;;  %p1073_p4 = scmp.lt.u32.totalorder %s1065_s3, %s1402_s5 }
 0x1a3   : > { %p1067_p1 = pnand %p1066_p9, %p1258_p10 }
 0x1a4   : > { %p1072_p13 = por %p1071_p7, %p1070_p3 }
 0x1a5   : > { %p1068_p2 = pneg %p1067_p1 }
 0x1a6   : > { %p1074_p6 = por %p1073_p4, %p1072_p13 }
 0x1a8   : > { %p1075_p8 = pnand %p1074_p6, %p1068_p2 }
 0x1aa   : > { %1078 = shalt.err (!%p1075_p8)
}
 0x1ab   : > { %900 = dma.vmem_to_hbm [thread:$0]  (%p1258_p10), %s1404_s6, 32, %s1402_s5, %s659_s8  }
 0x1ac PF: > { %s685_s29 = sand.u32 1, %s1117_s9   ;;  %p1471_p12 = scmp.ne.s32.totalorder %s1461_s20, 0 }
 0x1ad   : > { %p1472_p11 = scmp.ge.s32.totalorder %s1137_s14, 2  ;;  %s686_s17 = scalar_lea.sflag [#allocation4], %s685_s29 }
 0x1af   : > { %p911_p0 = pnand %p1472_p11, %p1471_p12 }
 0x1b1   : > { %1112 = dma.done.wait (!%p911_p0), %s686_s17, 32  }
 0x1b2   : > { %1114 = vsyncadd (!%p911_p0), %s686_s17, 4294967264  ;;  %s19_s14 = sadd.s32 1, %s1137_s14   ;;  %s1473_s9 = smov %s1121_s10 }
 0x1b3   : > { %p16_p5 = scmp.ge.s32.totalorder %s19_s14, 4   ;;  %s1474_s10 = smov %s1125_s11 }
 0x1b4   : > { %s1475_s11 = smov %s1267_s28  ;;  %s1476_s12 = smov %s1133_s13 }
 0x1b5   : > { %s1477_s13 = smov %s1479_s25  ;;  %18 = sbr.rel (!%p16_p5) target bundleno = 7 (0x7), region = 77 }
 0x1bc   :  { %691 = vsyncpa [#allocation3], 1 }
 0x1bd   :  { %693 = vsyncpa [#allocation3 + $0x1], 1 }
 0x1be   :  { %694 = vsyncpa [#allocation6], 1 }
 0x1bf   :  { %695 = vsyncpa [#allocation4], 1 }
 0x1c0   :  { %697 = vsyncpa [#allocation4 + $0x1], 1 }

</bundles_post_ra>
